<compile_context>
chip_gen: v7x
topology: tpu7x:2x2x1
jax: 0.10.0
libtpu: 0.0.40
codegen_flags: <defaults>
</compile_context>

<pallas_src>
import functools

import jax
import jax.numpy as jnp
from jax import lax
from jax.experimental import pallas as pl
from jax.experimental.pallas import tpu as pltpu


def _round_up(x, m):
    return ((x + m - 1) // m) * m


# ---------------------------------------------------------------------------
# Kernel 1: nodevec_i = tanh(alpha * (emb_i(idx) @ W_i^T + b_i))   (single block)
# ---------------------------------------------------------------------------
def nodevec_kernel(e1_ref, e2_ref, w1t_ref, b1_ref, w2t_ref, b2_ref,
                   n1_ref, n2_ref, *, alpha):
    n1 = jnp.tanh(alpha * (jnp.dot(e1_ref[...], w1t_ref[...],
                                   preferred_element_type=jnp.float32)
                           + b1_ref[...]))
    n2 = jnp.tanh(alpha * (jnp.dot(e2_ref[...], w2t_ref[...],
                                   preferred_element_type=jnp.float32)
                           + b2_ref[...]))
    n1_ref[...] = n1.astype(n1_ref.dtype)
    n2_ref[...] = n2.astype(n2_ref.dtype)


def _compute_nodevecs(idx, emb1, emb2, w1, b1, w2, b2, *, alpha):
    """Embedding gather (plain-JAX glue) + fused linear+tanh Pallas kernel (f32 out)."""
    n = idx.shape[0]
    d = emb1.shape[1]
    n_pad = _round_up(n, 128)

    e1 = jnp.take(emb1, idx, axis=0)
    e2 = jnp.take(emb2, idx, axis=0)
    if n_pad != n:
        pad = ((0, n_pad - n), (0, 0))
        e1 = jnp.pad(e1, pad)
        e2 = jnp.pad(e2, pad)

    vmem = pl.BlockSpec(memory_space=pltpu.MemorySpace.VMEM)
    return pl.pallas_call(
        functools.partial(nodevec_kernel, alpha=float(alpha)),
        out_shape=(jax.ShapeDtypeStruct((n_pad, d), jnp.float32),
                   jax.ShapeDtypeStruct((n_pad, d), jnp.float32)),
        in_specs=[vmem] * 6,
        out_specs=(vmem, vmem),
    )(e1, e2, w1.T, b1.reshape(1, -1), w2.T, b2.reshape(1, -1))


def _build_tables(idx, emb1, emb2, w1, b1, w2, b2, *, alpha,
                  table_dtype=jnp.bfloat16):
    """Concatenated MXU operand tables: L = alpha*[n1, n2], R = [n2, -n1] (bf16).

    L @ R^T == alpha * (n1 @ n2^T - n2 @ n1^T), so kernel 2 needs a single matmul
    and no alpha multiply.  Scaling is done in f32 before the single bf16 rounding.
    """
    n1, n2 = _compute_nodevecs(idx, emb1, emb2, w1, b1, w2, b2, alpha=alpha)
    tab_l = (alpha * jnp.concatenate([n1, n2], axis=-1)).astype(table_dtype)
    tab_r = jnp.concatenate([n2, -n1], axis=-1).astype(table_dtype)
    return tab_l, tab_r


# ---------------------------------------------------------------------------
# Kernel 2: row-tiled adjacency + per-row top-k masking
# ---------------------------------------------------------------------------
def adj_topk_kernel(seed_ref, l_ref, r_ref, adj_ref, *, k, n_valid):
    tq, n_pad = adj_ref.shape
    row0 = pl.program_id(0) * tq

    # alpha*a for this row strip in ONE MXU call (contract last dims, K = 2*d).
    a = lax.dot_general(l_ref[...], r_ref[...],
                        (((1,), (1,)), ((), ())),
                        preferred_element_type=jnp.float32)
    adj = jax.nn.relu(jnp.tanh(a))               # alpha already folded into L

    # Tie-break noise in [0, 0.01): integer hash of (global row, col, seed) on the
    # VPU.  Rank-equivalent to torch.rand_like(adj)*0.01 (uniform per element) and
    # portable (no TPU-PRNG primitives -> also runs under interpret mode).
    row = lax.broadcasted_iota(jnp.int32, (tq, n_pad), 0) + row0
    col = lax.broadcasted_iota(jnp.int32, (tq, n_pad), 1)
    h = (row * jnp.int32(374761393) + col * jnp.int32(668265263)
         + seed_ref[0]).astype(jnp.uint32)
    h = h * jnp.uint32(2654435761)
    h = h ^ (h >> 16)
    h = h * jnp.uint32(2246822519)
    noise = ((h >> 8).astype(jnp.int32).astype(jnp.float32)
             * jnp.float32(0.01 / 16777216.0))

    neg_inf = jnp.float32(-jnp.inf)
    scores = adj + noise
    if n_valid < n_pad:                           # trace-time branch: only when padded
        scores = jnp.where(col < n_valid, scores, neg_inf)

    # k-th largest score per row via k max-removal passes (k is small & static).
    def body(_, carry):
        cur, _ = carry
        kth = jnp.max(cur, axis=1, keepdims=True)
        return jnp.where(cur >= kth, neg_inf, cur), kth

    _, kth = lax.fori_loop(0, k, body,
                           (scores, jnp.zeros((tq, 1), jnp.float32)),
                           unroll=True)

    adj_ref[...] = jnp.where(scores >= kth, adj, 0.0).astype(adj_ref.dtype)


def graph_constructor_forward(idx, emb1, emb2, w1, b1, w2, b2, seed, *,
                              alpha, k, adj_dtype=jnp.float32):
    """Forward pass of graph_constructor (static_feat=None path)."""
    n = idx.shape[0]
    d = emb1.shape[1]
    assert 1 <= k <= n, "k must be in [1, number of nodes]"
    n_pad = _round_up(n, 128)
    d2 = 2 * d

    tab_l, tab_r = _build_tables(idx, emb1, emb2, w1, b1, w2, b2, alpha=alpha)

    # --- generation-aware tile / VMEM selection ---------------------------------
    try:
        vmem_cap = int(pltpu.get_tpu_info().vmem_capacity_bytes)
    except Exception:                      # no TPU attached / interpret mode
        vmem_cap = 64 << 20                # conservative (v7x-sized) default
    if vmem_cap <= (64 << 20):             # v7x: 64 MiB physical VMEM per TC
        budget, limit_cap = 36 << 20, 40 << 20
    else:                                  # v5e / v6e: 128 MiB
        budget, limit_cap = 88 << 20, 100 << 20

    # ~10 live (tq, n_pad) f32-equivalent temporaries (incl. double-buffered output).
    tq_cap = max(128, ((budget // (10 * 4 * n_pad)) // 128) * 128)
    # Keep >=2 grid steps whenever possible so the "parallel" axis spans both v7x TCs.
    steps_cap = n_pad // 2 if n_pad >= 256 else n_pad
    tq = 128
    for cand in (1024, 512, 256, 128):
        if cand <= tq_cap and cand <= steps_cap and n_pad % cand == 0:
            tq = cand
            break

    out_bytes = jnp.dtype(adj_dtype).itemsize
    tile_bytes = 4 * tq * n_pad
    tables_bytes = 2 * 2 * (n_pad * d2 * 2)        # both bf16 tables, double-buffered
    vmem_limit = int(min(max(12 * tile_bytes + tables_bytes + (4 << 20), 32 << 20),
                         limit_cap))

    kernel = functools.partial(adj_topk_kernel, k=int(k), n_valid=int(n))
    cost = pl.CostEstimate(
        flops=2 * n_pad * n_pad * d2,
        transcendentals=n_pad * n_pad,
        bytes_accessed=out_bytes * n_pad * n_pad + 2 * 2 * n_pad * d2 + 4)

    adj_pad = pl.pallas_call(
        kernel,
        out_shape=jax.ShapeDtypeStruct((n_pad, n_pad), adj_dtype),
        grid_spec=pltpu.PrefetchScalarGridSpec(
            num_scalar_prefetch=1,
            grid=(n_pad // tq,),
            in_specs=[
                # row strip of L: statically pipelined per grid step
                pl.BlockSpec((tq, d2), lambda i, seed_ref: (i, 0)),
                # full R table: constant index_map -> VMEM-resident across the grid
                pl.BlockSpec((n_pad, d2), lambda i, seed_ref: (0, 0)),
            ],
            out_specs=pl.BlockSpec((tq, n_pad), lambda i, seed_ref: (i, 0)),
        ),
        compiler_params=pltpu.CompilerParams(
            dimension_semantics=("parallel",),
            vmem_limit_bytes=vmem_limit),
        cost_estimate=cost,
    )(jnp.asarray([seed], dtype=jnp.int32), tab_l, tab_r)

    return adj_pad[:n, :n]


if __name__ == "__main__":
    # Small shapes consistent with the module: nnodes=16 graph nodes, dim=32, k=4.
    nnodes, dim, k, alpha = 16, 32, 4, 3.0

    key = jax.random.PRNGKey(0)
    k_e1, k_e2, k_w1, k_b1, k_w2, k_b2 = jax.random.split(key, 6)

    # Deterministic synthetic parameters (shapes follow nn.Embedding / nn.Linear).
    emb1 = jax.random.normal(k_e1, (nnodes, dim), jnp.float32)
    emb2 = jax.random.normal(k_e2, (nnodes, dim), jnp.float32)
    lim = 1.0 / jnp.sqrt(dim)
    w1 = jax.random.uniform(k_w1, (dim, dim), jnp.float32, -lim, lim)
    b1 = jax.random.uniform(k_b1, (dim,), jnp.float32, -lim, lim)
    w2 = jax.random.uniform(k_w2, (dim, dim), jnp.float32, -lim, lim)
    b2 = jax.random.uniform(k_b2, (dim,), jnp.float32, -lim, lim)

    idx = jnp.arange(nnodes, dtype=jnp.int32)
    seed = 1234  # seeds the in-kernel hash noise emulating torch.rand_like(adj)

    adj = graph_constructor_forward(idx, emb1, emb2, w1, b1, w2, b2, seed,
                                    alpha=alpha, k=k)
    adj = jax.block_until_ready(adj)

    # Reference dense adjacency built from the SAME bf16 tables the adjacency kernel
    # consumes, so only MXU accumulation order / tanh ulps can differ.
    tab_l, tab_r = _build_tables(idx, emb1, emb2, w1, b1, w2, b2, alpha=alpha)
    adj_full = jax.nn.relu(jnp.tanh(
        jnp.dot(tab_l[:nnodes], tab_r[:nnodes].T,
                preferred_element_type=jnp.float32)))

    assert adj.shape == (nnodes, nnodes)
    nz = adj > 0
    # (1) top-k sparsity: at most k surviving entries per row.
    assert int(jnp.max(jnp.sum(nz, axis=1))) <= k
    # (2) surviving values equal the dense adjacency at those positions.
    assert float(jnp.max(jnp.where(nz, jnp.abs(adj - adj_full), 0.0))) <= 5e-3
    # (3)/(4) entries clearly inside/outside the row top-k (beyond the 0.01
    # tie-break noise band) must be kept / dropped respectively.
    kth = jnp.sort(adj_full, axis=1)[:, -k][:, None]
    must_keep = adj_full > kth + 0.015
    must_drop = adj_full < kth - 0.015
    assert bool(jnp.all(jnp.where(must_keep, nz, True)))
    assert not bool(jnp.any(jnp.logical_and(must_drop, nz)))

    print("KERNEL_OK")
</pallas_src>

<mosaic_0001>
module attributes {stable_mosaic.version = 11 : i64} {
  func.func @nodevec_kernel(%arg0: memref<128x32xf32, #tpu.memory_space<vmem>>, %arg1: memref<128x32xf32, #tpu.memory_space<vmem>>, %arg2: memref<32x32xf32, #tpu.memory_space<vmem>>, %arg3: memref<1x32xf32, #tpu.memory_space<vmem>>, %arg4: memref<32x32xf32, #tpu.memory_space<vmem>>, %arg5: memref<1x32xf32, #tpu.memory_space<vmem>>, %arg6: memref<128x32xf32, #tpu.memory_space<vmem>>, %arg7: memref<128x32xf32, #tpu.memory_space<vmem>>) attributes {dimension_semantics = [], scalar_prefetch = 0 : i64, scratch_operands = 0 : i64, tpu.core_type = #tpu.core_type<tc>} {
    %c0 = arith.constant 0 : index
    %c0_0 = arith.constant 0 : index
    %0 = vector.load %arg0[%c0, %c0_0] : memref<128x32xf32, #tpu.memory_space<vmem>>, vector<128x32xf32>
    %c0_1 = arith.constant 0 : index
    %c0_2 = arith.constant 0 : index
    %1 = vector.load %arg2[%c0_1, %c0_2] : memref<32x32xf32, #tpu.memory_space<vmem>>, vector<32x32xf32>
    %cst = arith.constant dense<0.000000e+00> : vector<128x32xf32>
    %2 = tpu.matmul %0, %1, %cst {dimension_numbers = #tpu.dot_dimension_numbers<[1], [0], [0], [1], [0, 0, 1, 1], [], []>} : vector<128x32xf32>, vector<32x32xf32>, vector<128x32xf32> -> vector<128x32xf32>
    %c0_3 = arith.constant 0 : index
    %c0_4 = arith.constant 0 : index
    %3 = vector.load %arg3[%c0_3, %c0_4] : memref<1x32xf32, #tpu.memory_space<vmem>>, vector<1x32xf32>
    %4 = vector.broadcast %3 : vector<1x32xf32> to vector<128x32xf32>
    %5 = arith.addf %2, %4 : vector<128x32xf32>
    %cst_5 = arith.constant 3.000000e+00 : f32
    %6 = vector.broadcast %cst_5 : f32 to vector<128x32xf32>
    %7 = arith.mulf %6, %5 : vector<128x32xf32>
    %8 = math.tanh %7 : vector<128x32xf32>
    %c0_6 = arith.constant 0 : index
    %c0_7 = arith.constant 0 : index
    %9 = vector.load %arg1[%c0_6, %c0_7] : memref<128x32xf32, #tpu.memory_space<vmem>>, vector<128x32xf32>
    %c0_8 = arith.constant 0 : index
    %c0_9 = arith.constant 0 : index
    %10 = vector.load %arg4[%c0_8, %c0_9] : memref<32x32xf32, #tpu.memory_space<vmem>>, vector<32x32xf32>
    %cst_10 = arith.constant dense<0.000000e+00> : vector<128x32xf32>
    %11 = tpu.matmul %9, %10, %cst_10 {dimension_numbers = #tpu.dot_dimension_numbers<[1], [0], [0], [1], [0, 0, 1, 1], [], []>} : vector<128x32xf32>, vector<32x32xf32>, vector<128x32xf32> -> vector<128x32xf32>
    %c0_11 = arith.constant 0 : index
    %c0_12 = arith.constant 0 : index
    %12 = vector.load %arg5[%c0_11, %c0_12] : memref<1x32xf32, #tpu.memory_space<vmem>>, vector<1x32xf32>
    %13 = vector.broadcast %12 : vector<1x32xf32> to vector<128x32xf32>
    %14 = arith.addf %11, %13 : vector<128x32xf32>
    %cst_13 = arith.constant 3.000000e+00 : f32
    %15 = vector.broadcast %cst_13 : f32 to vector<128x32xf32>
    %16 = arith.mulf %15, %14 : vector<128x32xf32>
    %17 = math.tanh %16 : vector<128x32xf32>
    %c0_14 = arith.constant 0 : index
    %c0_15 = arith.constant 0 : index
    %18 = vector.load %arg6[%c0_14, %c0_15] : memref<128x32xf32, #tpu.memory_space<vmem>>, vector<128x32xf32>
    tpu.vector_store %arg6[%c0_14, %c0_15], %8 {strides = array<i32>} : memref<128x32xf32, #tpu.memory_space<vmem>>, vector<128x32xf32>,
    %c0_16 = arith.constant 0 : index
    %c0_17 = arith.constant 0 : index
    %19 = vector.load %arg7[%c0_16, %c0_17] : memref<128x32xf32, #tpu.memory_space<vmem>>, vector<128x32xf32>
    tpu.vector_store %arg7[%c0_16, %c0_17], %17 {strides = array<i32>} : memref<128x32xf32, #tpu.memory_space<vmem>>, vector<128x32xf32>,
    return
  }
}

</mosaic_0001>

<bundles_post_ra>
// kernel: tpu_custom_call.1
= control target key start
LH: loop header
LB: loop body
LE: loop exit
PB: predicated region body
PF: predicated region fallthrough
CT: control target
= control target key end

     0   :  { %vm52_vm0 = vcmask 261120   ;;  %s1150_s2 = inlined_call_operand.vmem [shape: f32[32,32], index: 2, kind: input, shape index: {}]   ;;  %s1151_s4 = inlined_call_operand.vmem [shape: f32[32,32], index: 4, kind: input, shape index: {}]   ;;  %s1152_s0 = inlined_call_operand.vmem [shape: f32[128,32], index: 0, kind: input, shape index: {}]   ;;  %s1153_s1 = inlined_call_operand.vmem [shape: f32[128,32], index: 1, kind: input, shape index: {}]   ;;  %s1154_s3 = inlined_call_operand.vmem [shape: f32[1,32], index: 3, kind: input, shape index: {}]   ;;  %s1155_s5 = inlined_call_operand.vmem [shape: f32[1,32], index: 5, kind: input, shape index: {}]   ;;  %s1156_s6 = inlined_call_operand.vmem [shape: f32[128,32], index: 6, kind: output, shape index: {0}]   ;;  %s1157_s7 = inlined_call_operand.vmem [shape: f32[128,32], index: 7, kind: output, shape index: {1}]  }
   0x1   :  { %v41_v0 = vld [vmem:[%s1150_s2] sm:$0xff]  ;;  %v42_v1 = vld [vmem:[%s1150_s2 + $0x8] sm:$0xff]  ;;  %v43_v5 = vld [vmem:[%s1150_s2 + $0x10] sm:$0xff] }
   0x2   :  { %v294_v2 = vld [vmem:[%s1151_s4] sm:$0xff]  ;;  %v708_v3 = vpack.c.bf16 %v42_v1, %v41_v0  ;;  %v295_v4 = vld [vmem:[%s1151_s4 + $0x8] sm:$0xff]  ;;  %v44_v6 = vld [vmem:[%s1150_s2 + $0x18] sm:$0xff] }
   0x3   :  { %v716_v7 = vpack.c.bf16 %v295_v4, %v294_v2  ;;  %v712_v8 = vpack.c.bf16 %v44_v6, %v43_v5  ;;  %v296_v9 = vld [vmem:[%s1151_s4 + $0x10] sm:$0xff]  ;;  %v297_v10 = vld [vmem:[%s1151_s4 + $0x18] sm:$0xff]  ;;  %v25_v11 = vld [vmem:[%s1152_s0] sm:$0xff] }
   0x4   :  { %709 = vmatprep.subr.bf16.mxu0 %v708_v3  ;;  %v720_v12 = vpack.c.bf16 %v297_v10, %v296_v9  ;;  %652 = vmatprep.mubr.msk.f32.mxu0 %vm52_vm0, %v25_v11  ;;  %v278_v13 = vld [vmem:[%s1153_s1] sm:$0xff]  ;;  %v26_v14 = vld [vmem:[%s1152_s0 + $0x8] sm:$0xff]  ;;  %v27_v16 = vld [vmem:[%s1152_s0 + $0x10] sm:$0xff] }
   0x5   :  { %717 = vmatprep.subr.bf16.mxu1 %v716_v7  ;;  %711 = vmatpush3.bf16.msra.mxu0 %v708_v3  ;;  %v279_v15 = vld [vmem:[%s1153_s1 + $0x8] sm:$0xff]  ;;  %v280_v17 = vld [vmem:[%s1153_s1 + $0x10] sm:$0xff]  ;;  %v28_v18 = vld [vmem:[%s1152_s0 + $0x18] sm:$0xff] }
   0x6   :  { %719 = vmatpush3.bf16.msra.mxu1 %v716_v7  ;;  %713 = vmatprep.subr.bf16.mxu0 %v712_v8  ;;  %v281_v19 = vld [vmem:[%s1153_s1 + $0x18] sm:$0xff]  ;;  %v29_v20 = vld [vmem:[%s1152_s0 + $0x20] sm:$0xff]  ;;  %v30_v22 = vld [vmem:[%s1152_s0 + $0x28] sm:$0xff] }
   0x7   :  { %721 = vmatprep.subr.bf16.mxu1 %v720_v12  ;;  %684 = vmatprep.mubr.msk.f32.mxu1 %vm52_vm0, %v278_v13  ;;  %v282_v21 = vld [vmem:[%s1153_s1 + $0x20] sm:$0xff]  ;;  %v283_v23 = vld [vmem:[%s1153_s1 + $0x28] sm:$0xff]  ;;  %v31_v24 = vld [vmem:[%s1152_s0 + $0x30] sm:$0xff] }
   0x8   :  { %v284_v25 = vld [vmem:[%s1153_s1 + $0x30] sm:$0xff]  ;;  %v32_v26 = vld [vmem:[%s1152_s0 + $0x38] sm:$0xff]  ;;  %v33_v28 = vld [vmem:[%s1152_s0 + $0x40] sm:$0xff] }
   0x9   :  { %715 = vmatpush3.bf16.msra.mxu0 %v712_v8  ;;  %v285_v27 = vld [vmem:[%s1153_s1 + $0x38] sm:$0xff]  ;;  %v286_v29 = vld [vmem:[%s1153_s1 + $0x40] sm:$0xff]  ;;  %v34_v30 = vld [vmem:[%s1152_s0 + $0x48] sm:$0xff] }
   0xa   :  { %723 = vmatpush3.bf16.msra.mxu1 %v720_v12  ;;  %v287_v31 = vld [vmem:[%s1153_s1 + $0x48] sm:$0xff]  ;;  %v35_v32 = vld [vmem:[%s1152_s0 + $0x50] sm:$0xff]  ;;  %v36_v34 = vld [vmem:[%s1152_s0 + $0x58] sm:$0xff] }
   0xb   :  { %v288_v33 = vld [vmem:[%s1153_s1 + $0x50] sm:$0xff]  ;;  %v289_v35 = vld [vmem:[%s1153_s1 + $0x58] sm:$0xff]  ;;  %v37_v36 = vld [vmem:[%s1152_s0 + $0x60] sm:$0xff] }
   0xc   :  { %653 = vmatmul.mubr.msk.f32.vlgmr.msra.gmra.mrb[0].mxu0 %vm52_vm0, %v26_v14  ;;  %v290_v37 = vld [vmem:[%s1153_s1 + $0x60] sm:$0xff]  ;;  %v38_v38 = vld [vmem:[%s1152_s0 + $0x68] sm:$0xff]  ;;  %v39_v40 = vld [vmem:[%s1152_s0 + $0x70] sm:$0xff] }
   0xd   :  { %685 = vmatmul.mubr.msk.f32.vlgmr.msra.gmra.mrb[0].mxu1 %vm52_vm0, %v279_v15  ;;  %655 = vmatprep.mubr.msk.f32.mxu0 %vm52_vm0, %v27_v16  ;;  %v291_v39 = vld [vmem:[%s1153_s1 + $0x68] sm:$0xff]  ;;  %v292_v41 = vld [vmem:[%s1153_s1 + $0x70] sm:$0xff]  ;;  %v40_v42 = vld [vmem:[%s1152_s0 + $0x78] sm:$0xff] }
   0xe   :  { %687 = vmatprep.mubr.msk.f32.mxu1 %vm52_vm0, %v280_v17  ;;  %v293_v43 = vld [vmem:[%s1153_s1 + $0x78] sm:$0xff]  ;;  %v983_v44 = vld [vmem:[%s1154_s3] ss:$0 sm:$0xff] }
   0xf   :  { %v988_v45 = vld [vmem:[%s1155_s5] ss:$0 sm:$0xff] }
  0x10   :  { %656 = vmatmul.mubr.msk.f32.gmra.mrb[2].mxu0 %vm52_vm0, %v28_v18 }
  0x11   :  { %688 = vmatmul.mubr.msk.f32.gmra.mrb[2].mxu1 %vm52_vm0, %v281_v19  ;;  %658 = vmatprep.mubr.msk.f32.mxu0 %vm52_vm0, %v29_v20 }
  0x12   :  { %690 = vmatprep.mubr.msk.f32.mxu1 %vm52_vm0, %v282_v21 }
  0x14   :  { %659 = vmatmul.mubr.msk.f32.gmra.mrb[4].mxu0 %vm52_vm0, %v30_v22 }
  0x15   :  { %691 = vmatmul.mubr.msk.f32.gmra.mrb[4].mxu1 %vm52_vm0, %v283_v23  ;;  %661 = vmatprep.mubr.msk.f32.mxu0 %vm52_vm0, %v31_v24 }
  0x16   :  { %693 = vmatprep.mubr.msk.f32.mxu1 %vm52_vm0, %v284_v25 }
  0x18   :  { %662 = vmatmul.mubr.msk.f32.gmra.mrb[6].mxu0 %vm52_vm0, %v32_v26 }
  0x19   :  { %694 = vmatmul.mubr.msk.f32.gmra.mrb[6].mxu1 %vm52_vm0, %v285_v27  ;;  %664 = vmatprep.mubr.msk.f32.mxu0 %vm52_vm0, %v33_v28 }
  0x1a   :  { %696 = vmatprep.mubr.msk.f32.mxu1 %vm52_vm0, %v286_v29 }
  0x1c   :  { %665 = vmatmul.mubr.msk.f32.gmra.mrb[8].mxu0 %vm52_vm0, %v34_v30 }
  0x1d   :  { %697 = vmatmul.mubr.msk.f32.gmra.mrb[8].mxu1 %vm52_vm0, %v287_v31  ;;  %667 = vmatprep.mubr.msk.f32.mxu0 %vm52_vm0, %v35_v32 }
  0x1e   :  { %699 = vmatprep.mubr.msk.f32.mxu1 %vm52_vm0, %v288_v33 }
  0x20   :  { %668 = vmatmul.mubr.msk.f32.gmra.mrb[10].mxu0 %vm52_vm0, %v36_v34 }
  0x21   :  { %700 = vmatmul.mubr.msk.f32.gmra.mrb[10].mxu1 %vm52_vm0, %v289_v35  ;;  %670 = vmatprep.mubr.msk.f32.mxu0 %vm52_vm0, %v37_v36 }
  0x22   :  { %702 = vmatprep.mubr.msk.f32.mxu1 %vm52_vm0, %v290_v37 }
  0x24   :  { %671 = vmatmul.mubr.msk.f32.gmra.mrb[12].mxu0 %vm52_vm0, %v38_v38 }
  0x25   :  { %703 = vmatmul.mubr.msk.f32.gmra.mrb[12].mxu1 %vm52_vm0, %v291_v39  ;;  %673 = vmatprep.mubr.msk.f32.mxu0 %vm52_vm0, %v39_v40 }
  0x26   :  { %705 = vmatprep.mubr.msk.f32.mxu1 %vm52_vm0, %v292_v41 }
  0x28   :  { %674 = vmatmul.mubr.msk.f32.gmra.mrb[14].mxu0 %vm52_vm0, %v40_v42 }
  0x29   :  { %706 = vmatmul.mubr.msk.f32.gmra.mrb[14].mxu1 %vm52_vm0, %v293_v43 }
  0xdf   :  { %v654_v46 = vpop.f32.mrb[0].mxu0 }
  0xe0   :  { %v173_v47 = vadd.f32 %v654_v46, %v983_v44  ;;  %v686_v48 = vpop.f32.mrb[0].mxu1  ;;  %v167_v49 = vpop.f32.mrb[1].mxu0 }
  0xe1   :  { %v425_v50 = vadd.f32 %v686_v48, %v988_v45  ;;  %v168_v51 = vadd.f32 %v983_v44, %v167_v49  ;;  %v419_v52 = vpop.f32.mrb[1].mxu1 }
  0xe2   :  { %v247_v53 = vmul.f32 3.0, %v173_v47  ;;  %v420_v54 = vadd.f32 %v988_v45, %v419_v52 }
  0xe3   :  { %v499_v55 = vmul.f32 3.0, %v425_v50  ;;  %v246_v56 = vmul.f32 3.0, %v168_v51  ;;  %v657_v57 = vpop.f32.mrb[2].mxu0 }
  0xe4   :  { %724 = vtanh.f32 %v247_v53  ;;  %v498_v58 = vmul.f32 3.0, %v420_v54  ;;  %v183_v59 = vadd.f32 %v657_v57, %v983_v44  ;;  %v689_v60 = vpop.f32.mrb[2].mxu1  ;;  %v177_v61 = vpop.f32.mrb[3].mxu0 }
  0xe5   :  { %726 = vtanh.f32 %v499_v55  ;;  %v435_v62 = vadd.f32 %v689_v60, %v988_v45  ;;  %v178_v63 = vadd.f32 %v983_v44, %v177_v61  ;;  %v429_v0 = vpop.f32.mrb[3].mxu1 }
  0xe6   :  { %728 = vtanh.f32 %v246_v56  ;;  %v249_v1 = vmul.f32 3.0, %v183_v59  ;;  %v430_v2 = vadd.f32 %v988_v45, %v429_v0 }
  0xe7   :  { %730 = vtanh.f32 %v498_v58  ;;  %v501_v3 = vmul.f32 3.0, %v435_v62  ;;  %v248_v4 = vmul.f32 3.0, %v178_v63  ;;  %v660_v5 = vpop.f32.mrb[4].mxu0 }
  0xe8   :  { %732 = vtanh.f32 %v249_v1  ;;  %v500_v6 = vmul.f32 3.0, %v430_v2  ;;  %v193_v7 = vadd.f32 %v660_v5, %v983_v44  ;;  %v692_v8 = vpop.f32.mrb[4].mxu1  ;;  %v187_v9 = vpop.f32.mrb[5].mxu0 }
  0xe9   :  { %734 = vtanh.f32 %v501_v3  ;;  %v445_v10 = vadd.f32 %v692_v8, %v988_v45  ;;  %v188_v11 = vadd.f32 %v983_v44, %v187_v9  ;;  %v439_v12 = vpop.f32.mrb[5].mxu1 }
  0xea   :  { %736 = vtanh.f32 %v248_v4  ;;  %v251_v13 = vmul.f32 3.0, %v193_v7  ;;  %v440_v14 = vadd.f32 %v988_v45, %v439_v12 }
  0xeb   :  { %738 = vtanh.f32 %v500_v6  ;;  %v503_v15 = vmul.f32 3.0, %v445_v10  ;;  %v250_v16 = vmul.f32 3.0, %v188_v11  ;;  %v663_v17 = vpop.f32.mrb[6].mxu0 }
  0xec   :  { %740 = vtanh.f32 %v251_v13  ;;  %v502_v18 = vmul.f32 3.0, %v440_v14  ;;  %v203_v19 = vadd.f32 %v663_v17, %v983_v44  ;;  %v695_v20 = vpop.f32.mrb[6].mxu1  ;;  %v197_v21 = vpop.f32.mrb[7].mxu0 }
  0xed   :  { %742 = vtanh.f32 %v503_v15  ;;  %v455_v22 = vadd.f32 %v695_v20, %v988_v45  ;;  %v198_v23 = vadd.f32 %v983_v44, %v197_v21  ;;  %v449_v24 = vpop.f32.mrb[7].mxu1 }
  0xee   :  { %v725_v25 = vpop.eup %724  ;;  %744 = vtanh.f32 %v250_v16  ;;  %v253_v26 = vmul.f32 3.0, %v203_v19  ;;  %v450_v27 = vadd.f32 %v988_v45, %v449_v24 }
  0xef   :  { %v727_v28 = vpop.eup %726  ;;  %531 = vst.msk [vmem:[%s1156_s6 + $0x8] sm:$0xff] %vm52_vm0, %v725_v25  ;;  %746 = vtanh.f32 %v502_v18  ;;  %v505_v29 = vmul.f32 3.0, %v455_v22  ;;  %v252_v30 = vmul.f32 3.0, %v198_v23  ;;  %v666_v31 = vpop.f32.mrb[8].mxu0 }
  0xf0   :  { %v729_v32 = vpop.eup %728  ;;  %547 = vst.msk [vmem:[%s1157_s7 + $0x8] sm:$0xff] %vm52_vm0, %v727_v28  ;;  %748 = vtanh.f32 %v253_v26  ;;  %v504_v33 = vmul.f32 3.0, %v450_v27  ;;  %v213_v34 = vadd.f32 %v666_v31, %v983_v44  ;;  %v698_v35 = vpop.f32.mrb[8].mxu1 }
  0xf1   :  { %v207_v36 = vpop.f32.mrb[9].mxu0  ;;  %v731_v37 = vpop.eup %730  ;;  %530 = vst.msk [vmem:[%s1156_s6] sm:$0xff] %vm52_vm0, %v729_v32  ;;  %750 = vtanh.f32 %v505_v29  ;;  %v465_v38 = vadd.f32 %v698_v35, %v988_v45 }
  0xf2   :  { %v208_v39 = vadd.f32 %v983_v44, %v207_v36  ;;  %v459_v40 = vpop.f32.mrb[9].mxu1  ;;  %v733_v41 = vpop.eup %732  ;;  %546 = vst.msk [vmem:[%s1157_s7] sm:$0xff] %vm52_vm0, %v731_v37  ;;  %752 = vtanh.f32 %v252_v30  ;;  %v255_v42 = vmul.f32 3.0, %v213_v34 }
  0xf3   :  { %v460_v43 = vadd.f32 %v988_v45, %v459_v40  ;;  %v735_v46 = vpop.eup %734  ;;  %533 = vst.msk [vmem:[%s1156_s6 + $0x18] sm:$0xff] %vm52_vm0, %v733_v41  ;;  %754 = vtanh.f32 %v504_v33  ;;  %v507_v47 = vmul.f32 3.0, %v465_v38  ;;  %v669_v49 = vpop.f32.mrb[10].mxu0 }
  0xf4   :  { %v254_v48 = vmul.f32 3.0, %v208_v39  ;;  %v737_v50 = vpop.eup %736  ;;  %549 = vst.msk [vmem:[%s1157_s7 + $0x18] sm:$0xff] %vm52_vm0, %v735_v46  ;;  %756 = vtanh.f32 %v255_v42  ;;  %v223_v52 = vadd.f32 %v669_v49, %v983_v44  ;;  %v701_v53 = vpop.f32.mrb[10].mxu1 }
  0xf5   :  { %v506_v51 = vmul.f32 3.0, %v460_v43  ;;  %v217_v54 = vpop.f32.mrb[11].mxu0  ;;  %v739_v55 = vpop.eup %738  ;;  %532 = vst.msk [vmem:[%s1156_s6 + $0x10] sm:$0xff] %vm52_vm0, %v737_v50  ;;  %758 = vtanh.f32 %v507_v47  ;;  %v475_v56 = vadd.f32 %v701_v53, %v988_v45 }
  0xf6   :  { %v218_v57 = vadd.f32 %v983_v44, %v217_v54  ;;  %v469_v58 = vpop.f32.mrb[11].mxu1  ;;  %v741_v59 = vpop.eup %740  ;;  %548 = vst.msk [vmem:[%s1157_s7 + $0x10] sm:$0xff] %vm52_vm0, %v739_v55  ;;  %760 = vtanh.f32 %v254_v48  ;;  %v257_v60 = vmul.f32 3.0, %v223_v52 }
  0xf7   :  { %v470_v61 = vadd.f32 %v988_v45, %v469_v58  ;;  %v743_v62 = vpop.eup %742  ;;  %535 = vst.msk [vmem:[%s1156_s6 + $0x28] sm:$0xff] %vm52_vm0, %v741_v59  ;;  %762 = vtanh.f32 %v506_v51  ;;  %v509_v63 = vmul.f32 3.0, %v475_v56  ;;  %v672_v1 = vpop.f32.mrb[12].mxu0 }
  0xf8   :  { %v256_v0 = vmul.f32 3.0, %v218_v57  ;;  %v745_v2 = vpop.eup %744  ;;  %551 = vst.msk [vmem:[%s1157_s7 + $0x28] sm:$0xff] %vm52_vm0, %v743_v62  ;;  %764 = vtanh.f32 %v257_v60  ;;  %v233_v4 = vadd.f32 %v672_v1, %v983_v44  ;;  %v704_v5 = vpop.f32.mrb[12].mxu1 }
  0xf9   :  { %v508_v3 = vmul.f32 3.0, %v470_v61  ;;  %v227_v6 = vpop.f32.mrb[13].mxu0  ;;  %v747_v7 = vpop.eup %746  ;;  %534 = vst.msk [vmem:[%s1156_s6 + $0x20] sm:$0xff] %vm52_vm0, %v745_v2  ;;  %766 = vtanh.f32 %v509_v63  ;;  %v485_v8 = vadd.f32 %v704_v5, %v988_v45 }
  0xfa   :  { %v228_v9 = vadd.f32 %v983_v44, %v227_v6  ;;  %v479_v10 = vpop.f32.mrb[13].mxu1  ;;  %v749_v11 = vpop.eup %748  ;;  %550 = vst.msk [vmem:[%s1157_s7 + $0x20] sm:$0xff] %vm52_vm0, %v747_v7  ;;  %768 = vtanh.f32 %v256_v0  ;;  %v259_v12 = vmul.f32 3.0, %v233_v4 }
  0xfb   :  { %v480_v13 = vadd.f32 %v988_v45, %v479_v10  ;;  %v751_v14 = vpop.eup %750  ;;  %537 = vst.msk [vmem:[%s1156_s6 + $0x38] sm:$0xff] %vm52_vm0, %v749_v11  ;;  %770 = vtanh.f32 %v508_v3  ;;  %v511_v15 = vmul.f32 3.0, %v485_v8  ;;  %v675_v17 = vpop.f32.mrb[14].mxu0 }
  0xfc   :  { %v258_v16 = vmul.f32 3.0, %v228_v9  ;;  %v753_v18 = vpop.eup %752  ;;  %553 = vst.msk [vmem:[%s1157_s7 + $0x38] sm:$0xff] %vm52_vm0, %v751_v14  ;;  %772 = vtanh.f32 %v259_v12  ;;  %v243_v20 = vadd.f32 %v675_v17, %v983_v44  ;;  %v707_v21 = vpop.f32.mrb[14].mxu1 }
  0xfd   :  { %v510_v19 = vmul.f32 3.0, %v480_v13  ;;  %v237_v22 = vpop.f32.mrb[15].mxu0  ;;  %v755_v23 = vpop.eup %754  ;;  %536 = vst.msk [vmem:[%s1156_s6 + $0x30] sm:$0xff] %vm52_vm0, %v753_v18  ;;  %774 = vtanh.f32 %v511_v15  ;;  %v495_v24 = vadd.f32 %v707_v21, %v988_v45 }
  0xfe   :  { %v238_v25 = vadd.f32 %v983_v44, %v237_v22  ;;  %v489_v26 = vpop.f32.mrb[15].mxu1  ;;  %v757_v27 = vpop.eup %756  ;;  %552 = vst.msk [vmem:[%s1157_s7 + $0x30] sm:$0xff] %vm52_vm0, %v755_v23  ;;  %776 = vtanh.f32 %v258_v16  ;;  %v261_v28 = vmul.f32 3.0, %v243_v20 }
  0xff   :  { %v490_v29 = vadd.f32 %v988_v45, %v489_v26  ;;  %v759_v30 = vpop.eup %758  ;;  %539 = vst.msk [vmem:[%s1156_s6 + $0x48] sm:$0xff] %vm52_vm0, %v757_v27  ;;  %778 = vtanh.f32 %v510_v19  ;;  %v513_v31 = vmul.f32 3.0, %v495_v24 }
 0x100   :  { %v260_v44 = vmul.f32 3.0, %v238_v25  ;;  %v761_v32 = vpop.eup %760  ;;  %555 = vst.msk [vmem:[%s1157_s7 + $0x48] sm:$0xff] %vm52_vm0, %v759_v30  ;;  %780 = vtanh.f32 %v261_v28 }
 0x101   :  { %v512_v33 = vmul.f32 3.0, %v490_v29  ;;  %v763_v34 = vpop.eup %762  ;;  %538 = vst.msk [vmem:[%s1156_s6 + $0x40] sm:$0xff] %vm52_vm0, %v761_v32  ;;  %782 = vtanh.f32 %v513_v31 }
 0x102   :  { %v765_v45 = vpop.eup %764  ;;  %554 = vst.msk [vmem:[%s1157_s7 + $0x40] sm:$0xff] %vm52_vm0, %v763_v34  ;;  %784 = vtanh.f32 %v260_v44 }
 0x103   :  { %v767_v35 = vpop.eup %766  ;;  %541 = vst.msk [vmem:[%s1156_s6 + $0x58] sm:$0xff] %vm52_vm0, %v765_v45  ;;  %786 = vtanh.f32 %v512_v33 }
 0x104   :  { %v769_v36 = vpop.eup %768  ;;  %557 = vst.msk [vmem:[%s1157_s7 + $0x58] sm:$0xff] %vm52_vm0, %v767_v35 }
 0x105   :  { %v771_v37 = vpop.eup %770  ;;  %540 = vst.msk [vmem:[%s1156_s6 + $0x50] sm:$0xff] %vm52_vm0, %v769_v36 }
 0x106   :  { %v773_v38 = vpop.eup %772  ;;  %556 = vst.msk [vmem:[%s1157_s7 + $0x50] sm:$0xff] %vm52_vm0, %v771_v37 }
 0x107   :  { %v775_v39 = vpop.eup %774  ;;  %543 = vst.msk [vmem:[%s1156_s6 + $0x68] sm:$0xff] %vm52_vm0, %v773_v38 }
 0x108   :  { %v777_v40 = vpop.eup %776  ;;  %559 = vst.msk [vmem:[%s1157_s7 + $0x68] sm:$0xff] %vm52_vm0, %v775_v39 }
 0x109   :  { %v779_v41 = vpop.eup %778  ;;  %542 = vst.msk [vmem:[%s1156_s6 + $0x60] sm:$0xff] %vm52_vm0, %v777_v40 }
 0x10a   :  { %v781_v42 = vpop.eup %780  ;;  %558 = vst.msk [vmem:[%s1157_s7 + $0x60] sm:$0xff] %vm52_vm0, %v779_v41 }
 0x10b   :  { %v783_v43 = vpop.eup %782  ;;  %545 = vst.msk [vmem:[%s1156_s6 + $0x78] sm:$0xff] %vm52_vm0, %v781_v42 }
 0x10c   :  { %v785_v46 = vpop.eup %784  ;;  %561 = vst.msk [vmem:[%s1157_s7 + $0x78] sm:$0xff] %vm52_vm0, %v783_v43 }
 0x10d   :  { %v787_v47 = vpop.eup %786  ;;  %544 = vst.msk [vmem:[%s1156_s6 + $0x70] sm:$0xff] %vm52_vm0, %v785_v46 }
 0x10e   :  { %560 = vst.msk [vmem:[%s1157_s7 + $0x70] sm:$0xff] %vm52_vm0, %v787_v47 }

</bundles_post_ra>
